<compile_context>
chip_gen: v7x
topology: tpu7x:2x2x1
jax: 0.10.0
libtpu: 0.0.40
codegen_flags: <defaults>
</compile_context>

<pallas_src>
import functools

import jax
import jax.numpy as jnp
from jax.experimental import pallas as pl
from jax.experimental.pallas import tpu as pltpu


# ----------------------------------------------------------------------------
# Tunables / hardware-derived budgets
# ----------------------------------------------------------------------------
_TARGET_SLAB_BYTES = 2 * 1024 * 1024     # ~1-2 MiB x slab saturates HBM roofline
_HEADROOM_BYTES = 6 * 1024 * 1024        # compiler internal scratch headroom


def _ceil_div(a, b):
    return -(-a // b)


def _round_up(a, b):
    return _ceil_div(a, b) * b


def _sublane(itemsize):
    # second-minor dim padding granularity per element width
    return {4: 8, 2: 16, 1: 32}.get(itemsize, 8)


def _vmem_capacity_bytes():
    try:
        return int(pltpu.get_tpu_info().vmem_capacity_bytes)
    except Exception:
        return 64 * 1024 * 1024          # conservative: v7x per-TensorCore VMEM


# ----------------------------------------------------------------------------
# Kernel bodies
# ----------------------------------------------------------------------------
def _se_kernel(x_ref, w1_ref, w2_ref, o_ref):
    """Single-pass SE over an x block of shape (tb, C, HW)."""
    hw = x_ref.shape[-1]
    # Squeeze: stream the f32 convert through the lane-axis reduce (XLU);
    # no full-tile f32 temporary is bound.
    pooled = jnp.sum(x_ref[...], axis=-1, dtype=jnp.float32) * (1.0 / hw)  # (tb, C)
    # Excitation: two tiny MXU matmuls + ReLU + sigmoid, all in f32.
    h = jnp.maximum(
        jnp.dot(pooled, w1_ref[...], preferred_element_type=jnp.float32), 0.0)
    y = jax.nn.sigmoid(
        jnp.dot(h, w2_ref[...], preferred_element_type=jnp.float32))        # (tb, C)
    # Scale: one whole-tile multiply, gate broadcast over the lane (HW) axis.
    o_ref[...] = x_ref[...] * y[:, :, None].astype(o_ref.dtype)


def _pool_sum_kernel(x_ref, psum_ref, *, hw_total, hw_chunk):
    """Two-pass fallback, pass 1: accumulate f32 channel sums over HW chunks."""
    h = pl.program_id(1)

    @pl.when(h == 0)
    def _():
        psum_ref[...] = jnp.zeros_like(psum_ref)

    x = x_ref[...]                                               # (tb, C, hw_chunk)
    lane = jax.lax.broadcasted_iota(jnp.int32, x.shape, 2) + h * hw_chunk
    xm = jnp.where(lane < hw_total, x, jnp.zeros_like(x))        # mask ragged chunk
    psum_ref[...] += jnp.sum(xm, axis=2, dtype=jnp.float32)[:, None, :]


def _scale_kernel(pooled_ref, w1_ref, w2_ref, x_ref, o_ref, gate_ref, *, inv_hw):
    """Two-pass fallback, pass 2: gate (once per batch tile) + scale per chunk."""
    h = pl.program_id(1)

    @pl.when(h == 0)
    def _():
        p = pooled_ref[:, 0, :] * inv_hw                         # (tb, C) f32 mean
        hid = jnp.maximum(
            jnp.dot(p, w1_ref[...], preferred_element_type=jnp.float32), 0.0)
        gate_ref[...] = jax.nn.sigmoid(
            jnp.dot(hid, w2_ref[...], preferred_element_type=jnp.float32))

    o_ref[...] = x_ref[...] * gate_ref[...][:, :, None].astype(o_ref.dtype)


# ----------------------------------------------------------------------------
# Tiling policy
# ----------------------------------------------------------------------------
def _pick_tb(B, per_batch_padded, data_budget):
    """Batch tile: cap the per-step slab near _TARGET_SLAB_BYTES, keep the grid
    at >= min(4, B) steps (pipeline overlap + both v7x cores fed), and make
    sure 4 double-buffered (in+out) slabs fit the padded-VMEM data budget."""
    tb = max(1, _TARGET_SLAB_BYTES // max(1, per_batch_padded))
    tb = min(tb, max(1, _ceil_div(B, min(4, B))))
    tb = min(tb, B)
    while tb > 1 and 4 * tb * per_batch_padded > data_budget:
        tb -= 1
    if 4 * tb * per_batch_padded > data_budget:
        return None                       # even tb=1 does not fit -> two-pass
    return tb


# ----------------------------------------------------------------------------
# pallas_call wrappers
# ----------------------------------------------------------------------------
def _se_single_pass(x2, w1, w2, tb, vmem_limit):
    B, C, HW = x2.shape
    Cr = w1.shape[1]
    itemsize = jnp.dtype(x2.dtype).itemsize
    x_bytes = x2.size * itemsize
    w_bytes = (w1.size * jnp.dtype(w1.dtype).itemsize +
               w2.size * jnp.dtype(w2.dtype).itemsize)

    return pl.pallas_call(
        _se_kernel,
        out_shape=jax.ShapeDtypeStruct(x2.shape, x2.dtype),
        grid_spec=pltpu.PrefetchScalarGridSpec(
            num_scalar_prefetch=0,
            grid=(_ceil_div(B, tb),),
            in_specs=[
                pl.BlockSpec((tb, C, HW), lambda b: (b, 0, 0)),
                pl.BlockSpec((C, Cr), lambda b: (0, 0)),
                pl.BlockSpec((Cr, C), lambda b: (0, 0)),
            ],
            out_specs=pl.BlockSpec((tb, C, HW), lambda b: (b, 0, 0)),
        ),
        compiler_params=pltpu.CompilerParams(
            dimension_semantics=("parallel",),
            vmem_limit_bytes=vmem_limit,
        ),
        cost_estimate=pl.CostEstimate(
            flops=4 * B * C * Cr + 3 * B * C * HW,
            transcendentals=B * C,
            bytes_accessed=2 * x_bytes + w_bytes),
    )(x2, w1, w2)


def _se_two_pass(x2, w1, w2, vmem_limit, data_budget, max_hw_chunk=None):
    """Fallback for slabs too large for single-pass VMEM residency.

    Pass 1 pools (f32 channel sums, accumulated across HW chunks); pass 2
    computes the gate once per batch tile (pl.when(h == 0) into VMEM scratch)
    and scales each HW chunk.  Costs one extra read of x (1.5x HBM traffic)
    but keeps arbitrarily large feature maps on-device.
    """
    B, C, HW = x2.shape
    Cr = w1.shape[1]
    itemsize = jnp.dtype(x2.dtype).itemsize
    c_pad = _round_up(C, _sublane(itemsize))

    hw_chunk = max(128, (_TARGET_SLAB_BYTES // (c_pad * itemsize)) // 128 * 128)
    if max_hw_chunk is not None:
        hw_chunk = min(hw_chunk, _round_up(max_hw_chunk, 128))
    while hw_chunk > 128 and 4 * c_pad * hw_chunk * itemsize > data_budget:
        hw_chunk -= 128
    if hw_chunk >= HW:
        hw_chunk = HW                     # full-extent block is always legal
    tb = 1
    nb = _ceil_div(B, tb)
    nh = _ceil_div(HW, hw_chunk)

    x_bytes = x2.size * itemsize
    pooled_bytes = B * C * 4
    w_bytes = (w1.size * jnp.dtype(w1.dtype).itemsize +
               w2.size * jnp.dtype(w2.dtype).itemsize)

    # ---- Pass 1: pooled channel sums (B, 1, C) in f32 ----
    pooled_sum = pl.pallas_call(
        functools.partial(_pool_sum_kernel, hw_total=HW, hw_chunk=hw_chunk),
        out_shape=jax.ShapeDtypeStruct((B, 1, C), jnp.float32),
        grid_spec=pltpu.PrefetchScalarGridSpec(
            num_scalar_prefetch=0,
            grid=(nb, nh),
            in_specs=[pl.BlockSpec((tb, C, hw_chunk), lambda b, h: (b, 0, h))],
            out_specs=pl.BlockSpec((tb, 1, C), lambda b, h: (b, 0, 0)),
        ),
        compiler_params=pltpu.CompilerParams(
            dimension_semantics=("parallel", "arbitrary"),
            vmem_limit_bytes=vmem_limit,
        ),
        cost_estimate=pl.CostEstimate(
            flops=B * C * HW,
            transcendentals=0,
            bytes_accessed=x_bytes + pooled_bytes),
    )(x2)

    # ---- Pass 2: excitation (once per batch tile) + scale per HW chunk ----
    return pl.pallas_call(
        functools.partial(_scale_kernel, inv_hw=1.0 / HW),
        out_shape=jax.ShapeDtypeStruct(x2.shape, x2.dtype),
        grid_spec=pltpu.PrefetchScalarGridSpec(
            num_scalar_prefetch=0,
            grid=(nb, nh),
            in_specs=[
                pl.BlockSpec((tb, 1, C), lambda b, h: (b, 0, 0)),
                pl.BlockSpec((C, Cr), lambda b, h: (0, 0)),
                pl.BlockSpec((Cr, C), lambda b, h: (0, 0)),
                pl.BlockSpec((tb, C, hw_chunk), lambda b, h: (b, 0, h)),
            ],
            out_specs=pl.BlockSpec((tb, C, hw_chunk), lambda b, h: (b, 0, h)),
            scratch_shapes=[pltpu.VMEM((tb, C), jnp.float32)],
        ),
        compiler_params=pltpu.CompilerParams(
            dimension_semantics=("parallel", "arbitrary"),
            vmem_limit_bytes=vmem_limit,
        ),
        cost_estimate=pl.CostEstimate(
            flops=4 * B * C * Cr + 2 * B * C * HW,
            transcendentals=B * C,
            bytes_accessed=2 * x_bytes + pooled_bytes + w_bytes),
    )(pooled_sum, w1, w2, x2)


def se_layer(x_nchw, w1, w2, *, force_two_pass=False, max_hw_chunk=None):
    """SE layer forward.

    x_nchw : (B, C, H, W)
    w1     : (C, C//r)   -- TRANSPOSE of PyTorch fc1.weight (which is (C//r, C))
    w2     : (C//r, C)   -- TRANSPOSE of PyTorch fc2.weight (which is (C, C//r))
    """
    B, C, H, W = x_nchw.shape
    HW = H * W
    Cr = w1.shape[1]
    assert w1.shape == (C, Cr) and w2.shape == (Cr, C), (
        "pass the TRANSPOSES of the PyTorch fc weights: w1=(C,C//r), w2=(C//r,C)")

    # Keep (B, C, HW) end-to-end: no wrapper-side transposes (a mem-bound op
    # cannot afford extra HBM round-trips).  Small HW only pads VMEM lanes.
    x2 = x_nchw.reshape(B, C, HW)
    itemsize = jnp.dtype(x2.dtype).itemsize

    # Generation-aware scoped VMEM limit (<= 60% of physical: ~38 MiB on
    # v7x's 64 MiB per TensorCore, 48 MiB on 128 MiB v5e/v6e).
    vmem_cap = _vmem_capacity_bytes()
    vmem_limit = min(48 * 1024 * 1024, (vmem_cap * 3) // 5)
    w_itemsize = jnp.dtype(w1.dtype).itemsize
    w_pad_bytes = (_round_up(C, 8) * _round_up(Cr, 128) +
                   _round_up(Cr, 8) * _round_up(C, 128)) * w_itemsize
    data_budget = max(0, vmem_limit - w_pad_bytes - _HEADROOM_BYTES)

    # Padding-aware per-batch slab size (sublane -> 8/16/32, lane -> 128).
    per_batch_padded = _round_up(C, _sublane(itemsize)) * _round_up(HW, 128) * itemsize

    tb = None if force_two_pass else _pick_tb(B, per_batch_padded, data_budget)
    if tb is None:
        out2 = _se_two_pass(x2, w1, w2, vmem_limit, data_budget, max_hw_chunk)
    else:
        out2 = _se_single_pass(x2, w1, w2, tb, vmem_limit)
    return out2.reshape(B, C, H, W)


# ----------------------------------------------------------------------------
# Reference & tests
# ----------------------------------------------------------------------------
def se_layer_ref(x, w1, w2):
    """Pure-JAX reference mirroring the PyTorch forward."""
    pooled = jnp.mean(x, axis=(2, 3))                   # (B, C)
    h = jnp.maximum(pooled @ w1, 0.0)                   # (B, C//r)
    y = jax.nn.sigmoid(h @ w2)                          # (B, C)
    return x * y[:, :, None, None]


if __name__ == "__main__":
    key = jax.random.PRNGKey(0)

    def make_case(k, B, C, H, W, r, dtype=jnp.float32):
        k_x, k_w1, k_w2 = jax.random.split(k, 3)
        Cr = max(1, C // r)
        x = jax.random.normal(k_x, (B, C, H, W), dtype=jnp.float32).astype(dtype)
        w1 = jax.random.normal(k_w1, (C, Cr), dtype=jnp.float32) * 0.1
        w2 = jax.random.normal(k_w2, (Cr, C), dtype=jnp.float32) * 0.1
        return x, w1, w2

    # 1) HW lane-dense main path (HW = 256), grid of 4 steps.
    x, w1, w2 = make_case(jax.random.fold_in(key, 1), 4, 32, 16, 16, 16)
    out = jax.block_until_ready(se_layer(x, w1, w2))
    ref = se_layer_ref(x, w1, w2)
    assert out.shape == x.shape
    assert jnp.allclose(out, ref, atol=1e-5, rtol=1e-5), "mismatch: main (HW=256)"

    # 2) Late-stage shape, HW = 49 (< 128): kept in (B, C, HW), no transposes.
    x, w1, w2 = make_case(jax.random.fold_in(key, 2), 2, 128, 7, 7, 16)
    out = jax.block_until_ready(se_layer(x, w1, w2))
    ref = se_layer_ref(x, w1, w2)
    assert jnp.allclose(out, ref, atol=1e-5, rtol=1e-5), "mismatch: main (HW=49)"

    # 3) Ragged batch: B=5 with tb=2 -> grid=3, last block partially masked.
    x, w1, w2 = make_case(jax.random.fold_in(key, 3), 5, 32, 16, 16, 16)
    out = jax.block_until_ready(se_layer(x, w1, w2))
    ref = se_layer_ref(x, w1, w2)
    assert jnp.allclose(out, ref, atol=1e-5, rtol=1e-5), "mismatch: ragged batch"

    # 4) Two-pass fallback path (pool-accumulate over 4 ragged HW chunks).
    x, w1, w2 = make_case(jax.random.fold_in(key, 4), 3, 32, 20, 20, 16)
    out = jax.block_until_ready(
        se_layer(x, w1, w2, force_two_pass=True, max_hw_chunk=128))
    ref = se_layer_ref(x, w1, w2)
    assert jnp.allclose(out, ref, atol=1e-5, rtol=1e-5), "mismatch: two-pass"

    # 5) bf16 activations (kernel pools/gates in f32; compare vs f32 reference).
    x, w1, w2 = make_case(jax.random.fold_in(key, 5), 2, 64, 8, 8, 16,
                          dtype=jnp.bfloat16)
    out = jax.block_until_ready(se_layer(x, w1, w2))
    ref = se_layer_ref(x.astype(jnp.float32), w1, w2)
    assert jnp.allclose(out.astype(jnp.float32), ref, atol=5e-2, rtol=5e-2), \
        "mismatch: bf16"

    print("KERNEL_OK")
</pallas_src>

<mosaic_0001>
module attributes {stable_mosaic.version = 11 : i64} {
  func.func @_se_kernel(%arg0: i32, %arg1: memref<1x32x256xf32, #tpu.memory_space<vmem>>, %arg2: memref<32x2xf32, #tpu.memory_space<vmem>>, %arg3: memref<2x32xf32, #tpu.memory_space<vmem>>, %arg4: memref<1x32x256xf32, #tpu.memory_space<vmem>>) attributes {dimension_semantics = [#tpu.dimension_semantics<parallel>], iteration_bounds = array<i64: 4>, scalar_prefetch = 0 : i64, scratch_operands = 0 : i64, tpu.core_type = #tpu.core_type<tc>, window_params = [{transform_indices = @transform_0, window_bounds = array<i64: 1, 32, 256>}, {pipeline_mode = #tpu.pipeline_mode<synchronous>, transform_indices = @transform_1, window_bounds = array<i64: 32, 2>}, {pipeline_mode = #tpu.pipeline_mode<synchronous>, transform_indices = @transform_2, window_bounds = array<i64: 2, 32>}, {transform_indices = @transform_3, window_bounds = array<i64: 1, 32, 256>}]} {
    %c0 = arith.constant 0 : index
    %c0_0 = arith.constant 0 : index
    %c0_1 = arith.constant 0 : index
    %0 = vector.load %arg1[%c0, %c0_0, %c0_1] : memref<1x32x256xf32, #tpu.memory_space<vmem>>, vector<1x32x256xf32>
    %cst = arith.constant dense<0.000000e+00> : vector<1x32xf32>
    %1 = vector.multi_reduction <add>, %0, %cst [2] : vector<1x32x256xf32> to vector<1x32xf32>
    %cst_2 = arith.constant 3.906250e-03 : f32
    %2 = vector.broadcast %cst_2 : f32 to vector<1x32xf32>
    %3 = arith.mulf %1, %2 : vector<1x32xf32>
    %c0_3 = arith.constant 0 : index
    %c0_4 = arith.constant 0 : index
    %4 = vector.load %arg2[%c0_3, %c0_4] : memref<32x2xf32, #tpu.memory_space<vmem>>, vector<32x2xf32>
    %cst_5 = arith.constant dense<0.000000e+00> : vector<1x2xf32>
    %5 = tpu.matmul %3, %4, %cst_5 {dimension_numbers = #tpu.dot_dimension_numbers<[1], [0], [0], [1], [0, 0, 1, 1], [], []>} : vector<1x32xf32>, vector<32x2xf32>, vector<1x2xf32> -> vector<1x2xf32>
    %cst_6 = arith.constant 0.000000e+00 : f32
    %6 = vector.broadcast %cst_6 : f32 to vector<1x2xf32>
    %7 = arith.maximumf %5, %6 : vector<1x2xf32>
    %c0_7 = arith.constant 0 : index
    %c0_8 = arith.constant 0 : index
    %8 = vector.load %arg3[%c0_7, %c0_8] : memref<2x32xf32, #tpu.memory_space<vmem>>, vector<2x32xf32>
    %cst_9 = arith.constant dense<0.000000e+00> : vector<1x32xf32>
    %9 = tpu.matmul %7, %8, %cst_9 {dimension_numbers = #tpu.dot_dimension_numbers<[1], [0], [0], [1], [0, 0, 1, 1], [], []>} : vector<1x2xf32>, vector<2x32xf32>, vector<1x32xf32> -> vector<1x32xf32>
    %10 = arith.negf %9 : vector<1x32xf32>
    %11 = math.exp %10 : vector<1x32xf32>
    %cst_10 = arith.constant 1.000000e+00 : f32
    %12 = vector.broadcast %cst_10 : f32 to vector<1x32xf32>
    %13 = arith.addf %12, %11 : vector<1x32xf32>
    %14 = arith.divf %12, %13 : vector<1x32xf32>
    %c0_11 = arith.constant 0 : index
    %c0_12 = arith.constant 0 : index
    %c0_13 = arith.constant 0 : index
    %15 = vector.load %arg1[%c0_11, %c0_12, %c0_13] : memref<1x32x256xf32, #tpu.memory_space<vmem>>, vector<1x32x256xf32>
    %16 = vector.shape_cast %14 : vector<1x32xf32> to vector<1x32x1xf32>
    %17 = vector.broadcast %16 : vector<1x32x1xf32> to vector<1x32x256xf32>
    %18 = arith.mulf %15, %17 : vector<1x32x256xf32>
    %c0_14 = arith.constant 0 : index
    %c0_15 = arith.constant 0 : index
    %c0_16 = arith.constant 0 : index
    %19 = vector.load %arg4[%c0_14, %c0_15, %c0_16] : memref<1x32x256xf32, #tpu.memory_space<vmem>>, vector<1x32x256xf32>
    tpu.vector_store %arg4[%c0_14, %c0_15, %c0_16], %18 {strides = array<i32>} : memref<1x32x256xf32, #tpu.memory_space<vmem>>, vector<1x32x256xf32>,
    return
  }
  func.func @transform_0(%arg0: i32) -> (i32, i32, i32) {
    %c0_i32 = arith.constant 0 : i32
    %c0_i32_0 = arith.constant 0 : i32
    %c0_i32_1 = arith.constant 0 : i32
    return %arg0, %c0_i32, %c0_i32_0 : i32, i32, i32
  }
  func.func @transform_1(%arg0: i32) -> (i32, i32) {
    %c0_i32 = arith.constant 0 : i32
    %c0_i32_0 = arith.constant 0 : i32
    %c0_i32_1 = arith.constant 0 : i32
    return %c0_i32, %c0_i32_0 : i32, i32
  }
  func.func @transform_2(%arg0: i32) -> (i32, i32) {
    %c0_i32 = arith.constant 0 : i32
    %c0_i32_0 = arith.constant 0 : i32
    %c0_i32_1 = arith.constant 0 : i32
    return %c0_i32, %c0_i32_0 : i32, i32
  }
  func.func @transform_3(%arg0: i32) -> (i32, i32, i32) {
    %c0_i32 = arith.constant 0 : i32
    %c0_i32_0 = arith.constant 0 : i32
    %c0_i32_1 = arith.constant 0 : i32
    return %arg0, %c0_i32, %c0_i32_0 : i32, i32, i32
  }
}

</mosaic_0001>

<bundles_post_ra>
// kernel: tpu_custom_call.1
= control target key start
LH: loop header
LB: loop body
LE: loop exit
PB: predicated region body
PF: predicated region fallthrough
CT: control target
= control target key end

     0   :  { %8 = vsyncpa [#allocation3], 0  ;;  %s973_s0 = inlined_call_operand.hbm [shape: f32[4,32,256], index: 0, kind: input, shape index: {}]   ;;  %s974_s1 = inlined_call_operand.vmem [shape: f32[32,2], index: 1, kind: input, shape index: {}]   ;;  %s975_s2 = inlined_call_operand.vmem [shape: f32[2,32], index: 2, kind: input, shape index: {}]   ;;  %s976_s3 = inlined_call_operand.hbm [shape: f32[4,32,256], index: 3, kind: output, shape index: {}]  }
   0x1   :  { %10 = vsyncpa [#allocation3 + $0x1], 0 }
   0x2   :  { %11 = vsyncpa [#allocation4], 0 }
   0x3   :  { %13 = vsyncpa [#allocation4 + $0x1], 0  ;;  %s762_s12 = smov 0   ;;  %s764_s13 = smov 0  }
   0x4   :  { %s766_s14 = smov 0   ;;  %s768_s15 = smov 0  }
   0x5 LB: > { %s783_s16 = sadd.s32 4294967295, %s731_s15   ;;  %s529_s17 = sadd.s32 4294967294, %s731_s15   ;;  %s731_s15 = sphi %s768_s15, %s988_s15   ;;  %s727_s14 = sphi %s766_s14, %s987_s14   ;;  %s723_s13 = sphi %s764_s13, %s986_s13   ;;  %s719_s12 = sphi %s762_s12, %s985_s12  }
   0x6   : > { %s787_s18 = sadd.s32 1, %s731_s15   ;;  %s26_s19 = sadd.s32 1, %s727_s14 }
   0x7   : > { %s23_s20 = ssub.s32 %s731_s15, %s787_s18  ;;  %p33_p0 = scmp.ne.s32.totalorder %s727_s14, %s723_s13 }
   0x8   : > { %p24_p1 = scmp.eq.s32.totalorder %s23_s20, 0  ;;  %p34_p2 = scmp.eq.s32.totalorder %s731_s15, 0 }
   0x9   : > { %p39_p3 = scmp.ne.s32.totalorder %s723_s13, %s719_s12  ;;  %p40_p4 = scmp.eq.s32.totalorder %s783_s16, 0 }
   0xa   : > { %s799_s21 = scalar_select %p24_p1, %s727_s14, %s26_s19  }
   0xb   : > { %p801_p5 = por %p34_p2, %p33_p0  ;;  %p805_p6 = por %p40_p4, %p39_p3 }
   0xc   : > { %p105_p7 = scmp.eq.s32.totalorder %s783_s16, 3  ;;  %p111_p8 = scmp.eq.s32.totalorder %s529_s17, 3 }
   0xd   : > { %p590_p9 = scmp.lt.s32.totalorder %s731_s15, 4  ;;  %s137_s26 = sand.u32 1, %s727_s14  }
   0xe   : > { %p811_p10 = por %p105_p7, %p33_p0  ;;  %p815_p11 = por %p111_p8, %p39_p3 }
   0xf   : > { %s547_s27 = sshll.u32 %s731_s15, 10  ;;  %s532_s28 = sshll.u32 %s137_s26, 6 }
  0x10   : > { %s980_s24 = scalar_select %p811_p10, 1, 0 }
  0x11   : > { %s981_s25 = scalar_select %p815_p11, 1, 0 }
  0x12   : > { %s824_s4 = scalar_lea.hbm %s973_s0, %s547_s27  ;;  %s141_s5 = scalar_lea.vmem [#allocation2], %s532_s28 }
  0x13   : > { %s148_s6 = sshll.u32 %s141_s5, 4  ;;  %p828_p12 = pnand %p590_p9, %p801_p5  ;;  %s832_s6 = int_to_ptr.vmem [resolvable:$true] %s148_s6 }
  0x14   : > { %s834_s8 = scalar_lea.sflag [#allocation3], %s137_s26  ;;  %s635_s9 = scalar_lea.hbm %s824_s4, 1024 }
  0x15   : > { %p636_p13 = scmp.ne.s32.totalorder %s824_s4, %s635_s9  ;;  %p637_p0 = pneg %p828_p12 }
  0x16   : > { %s640_s17 = scalar_lea.hbm %s973_s0, 4096  ;;  %p641_p3 = scmp.lt.u32.totalorder %s824_s4, %s973_s0 }
  0x17   : > { %p638_p1 = pnand %p637_p0, %p636_p13  ;;  %p642_p4 = scmp.lt.u32.totalorder %s640_s17, %s635_s9 }
  0x18   : > { %p644_p7 = scmp.lt.u32.totalorder %s635_s9, %s824_s4 }
  0x19   : > { %p639_p2 = pneg %p638_p1  ;;  %p643_p5 = por %p642_p4, %p641_p3 }
  0x1b   : > { %p645_p8 = por %p644_p7, %p643_p5 }
  0x1d   : > { %p646_p9 = pnand %p645_p8, %p639_p2 }
  0x1f   : > { %649 = shalt.err (!%p646_p9)
}
  0x20   : > { %s650_s22 = scalar_lea.vmem %s832_s6, 1024  ;;  %s733_s26 = smov [#allocation2]  }
  0x21   : > { %p651_p13 = scmp.ne.s32.totalorder %s832_s6, %s650_s22  ;;  %s655_s27 = sshll.u32 %s733_s26, 4  ;;  %s656_s27 = int_to_ptr.vmem [resolvable:$false] %s655_s27 }
  0x22   : > { %s657_s28 = scalar_lea.vmem %s656_s27, 2048  ;;  %p658_p10 = scmp.lt.s32.totalorder %s832_s6, %s656_s27 }
  0x23   : > { %p653_p1 = pnand %p651_p13, %p637_p0  ;;  %p659_p3 = scmp.lt.s32.totalorder %s657_s28, %s650_s22 }
  0x25   : > { %p654_p11 = pneg %p653_p1  ;;  %p660_p4 = por %p659_p3, %p658_p10 }
  0x27   : > { %p661_p5 = pnand %p660_p4, %p654_p11 }
  0x29   : > { %664 = shalt.err (!%p661_p5)
}
  0x2a   : > { %s734_s29 = smov 256   ;;  %s735_s30 = smov 16  }
  0x2b   : > { %585 = dma.hbm_to_vmem [thread:$0]  (!%p828_p12), %s824_s4, 1024, %s832_s6, %s834_s8, %s734_s29, %s734_s29, %s735_s30  }
  0x2c   : > { %p535_p0 = scmp.ge.s32.totalorder %s731_s15, 1  ;;  %p156_p2 = scmp.lt.s32.totalorder %s731_s15, 5 }
  0x2e   : > { %p157_p7 = pnand %p535_p0, %p156_p2 }
  0x2f   : > { %s865_s5 = sand.u32 (!%p157_p7), 1, %s723_s13  }
  0x30   : > { %160 = sbr.rel (%p157_p7) target bundleno = 806 (0x326), region = 32  ;;  %s536_s9 = sshll.u32 (!%p157_p7), %s865_s5, 6 }
  0x31   : > { %s163_s10 = scalar_lea.sflag (!%p157_p7), [#allocation3], %s865_s5  ;;  %s166_s11 = scalar_lea.vmem (!%p157_p7), [#allocation2], %s536_s9 }
  0x37   : > { %710 = dma.done.wait (%p805_p6), %s163_s10, 1024  }
  0x38   : > { %712 = vsyncadd (%p805_p6), %s163_s10, 4294966272  ;;  %v875_v0 = vld [vmem:[%s166_s11] sm:$0xff]  ;;  %v877_v1 = vld [vmem:[%s166_s11 + $0x8] sm:$0xff]  ;;  %v736_v15 = vmov 0.0|0.0   ;;  %vm737_vm0 = vmmov 0   ;;  %v738_v19 = vmov 0.0   ;;  %v221_v20 = vlaneseq }
  0x39   : > { %v879_v2 = vld [vmem:[%s166_s11 + $0x20] sm:$0xff]  ;;  %v197_v3 = vadd.f32 %v877_v1, %v875_v0  ;;  %v883_v4 = vld [vmem:[%s166_s11 + $0x28] sm:$0xff]  ;;  %v885_v5 = vld [vmem:[%s166_s11 + $0x10] sm:$0xff]  ;;  %572 = vmatprep.subr.bf16.mxu0 %v736_v15  ;;  %564 = vmatprep.mubr.msk.f32.mxu0 %vm737_vm0, %v738_v19  ;;  %vm232_vm1 = vcmask 130112   ;;  %vm239_vm2 = vcmask 195712   ;;  %vm246_vm3 = vcmask 261312  }
  0x3a   : > { %v887_v6 = vld [vmem:[%s166_s11 + $0x18] sm:$0xff]  ;;  %v203_v7 = vadd.f32 %v883_v4, %v879_v2  ;;  %v891_v8 = vld [vmem:[%s166_s11 + $0x30] sm:$0xff]  ;;  %v213_v12 = vld [vmem:[%s974_s1] sm:$0xff]  ;;  %567 = vmatprep.subr.mxu1 %v738_v19  ;;  %569 = vmatprep.mubr.msk.f32.mxu1 %vm737_vm0, %v738_v19  ;;  %v222_v21 = vand.u32 127, %v221_v20  ;;  %v224_v22 = vshrl.u32 %v221_v20, 7  ;;  %vm248_vm4 = vcmask 261120  }
  0x3b   : > { %v893_v9 = vld [vmem:[%s166_s11 + $0x38] sm:$0xff]  ;;  %198 = vadd.xlane.f32.xlu0 %v197_v3  ;;  %v200_v10 = vadd.f32 %v887_v6, %v885_v5  ;;  %v214_v13 = vld [vmem:[%s974_s1 + $0x8] sm:$0xff]  ;;  %v215_v16 = vld [vmem:[%s974_s1 + $0x10] sm:$0xff]  ;;  %vm327_vm5 = vcmask 1041408   ;;  %vm323_vm6 = vcmask 15360   ;;  %s188_s27 = scalar_lea.vmem [#allocation5], %s536_s9 }
  0x3c   : > { %204 = vadd.xlane.f32.xlu1 %v203_v7  ;;  %v206_v11 = vadd.f32 %v893_v9, %v891_v8  ;;  %v573_v14 = vpack.c.bf16 %v214_v13, %v213_v12  ;;  %v216_v17 = vld [vmem:[%s974_s1 + $0x18] sm:$0xff]  ;;  %v227_v23 = vadd.s32 4294967288, %v222_v21  ;;  %v234_v25 = vadd.s32 4294967280, %v222_v21  ;;  %v322_v45 = vld [vmem:[%s975_s2] sm:$0x3]  ;;  %s456_s28 = sshll.u32 %s188_s27, 4  ;;  %s923_s28 = int_to_ptr.vmem [resolvable:$true] %s456_s28 }
  0x3d   : > { %v576_v18 = vpack.c.bf16 %v216_v17, %v215_v16  ;;  %v241_v26 = vadd.s32 4294967272, %v222_v21  ;;  %v225_v28 = vsub.s32 %v222_v21, %v224_v22  ;;  %568 = vmatpush3.msk.msra.mxu1 %vm327_vm5, %v322_v45  ;;  %v409_v54 = vsub.s32 0, %v224_v22  ;;  %s548_s29 = sshll.u32 %s783_s16, 10  ;;  %s443_s16 = scalar_lea.sflag [#allocation4], %s865_s5 }
  0x3e   : > { %574 = vmatpush3.bf16.msra.mxu0 %v573_v14  ;;  %v230_v30 = vsub.s32 %v227_v23, %v224_v22  ;;  %v237_v31 = vsub.s32 %v234_v25, %v224_v22  ;;  %s928_s10 = scalar_lea.hbm %s976_s3, %s548_s29  ;;  %s665_s11 = scalar_lea.vmem %s923_s28, 1024 }
  0x3f   : > { %201 = vadd.xlane.f32.xlu0 %v200_v10  ;;  %575 = vmatprep.subr.bf16.mxu0 %v736_v15  ;;  %v244_v34 = vsub.s32 %v241_v26, %v224_v22  ;;  %p666_p6 = scmp.ne.s32.totalorder %s923_s28, %s665_s11  ;;  %p983_p10 = scmp.ne.s32.totalorder %s980_s24, 0 }
  0x40   : > { %207 = vadd.xlane.f32.xlu1 %v206_v11  ;;  %s739_s23 = smov [#allocation5]  }
  0x41   : > { %p667_p11 = pnand %p666_p6, %p983_p10  ;;  %s669_s4 = sshll.u32 %s739_s23, 4  ;;  %s670_s4 = int_to_ptr.vmem [resolvable:$false] %s669_s4 }
  0x42   : > { %577 = vmatpush3.bf16.msra.mxu0 %v576_v18  ;;  %s671_s6 = scalar_lea.vmem %s670_s4, 2048  ;;  %p672_p8 = scmp.lt.s32.totalorder %s923_s28, %s670_s4 }
  0x43   : > { %p668_p12 = pneg %p667_p11  ;;  %p673_p9 = scmp.lt.s32.totalorder %s671_s6, %s665_s11 }
  0x45   : > { %p674_p13 = por %p673_p9, %p672_p8 }
  0x47   : > { %p675_p1 = pnand %p674_p13, %p668_p12 }
  0xc8   : > { %v199_v24 = vpop.xlane.xlu0 %198 }
  0xc9   : > { %v205_v27 = vpop.xlane.xlu1 %204  ;;  %v209_v29 = vmul.f32 0.00390625, %v199_v24 }
  0xca   : > { %v211_v32 = vmul.f32 0.00390625, %v205_v27 }
  0xcb   : > { %v226_v38 = vrot.slane %v209_v29, %v225_v28 }
  0xcc   : > { %v202_v33 = vpop.xlane.xlu0 %201  ;;  %v238_v40 = vrot.slane %v211_v32, %v237_v31 }
  0xcd   : > { %v210_v35 = vmul.f32 0.00390625, %v202_v33  ;;  %v208_v36 = vpop.xlane.xlu1 %207 }
  0xce   : > { %v212_v37 = vmul.f32 0.00390625, %v208_v36 }
  0xcf   : > { %v231_v39 = vrot.slane %v210_v35, %v230_v30 }
  0xd0   : > { %v245_v41 = vrot.slane %v212_v37, %v244_v34 }
  0xd1   : > { %v233_v42 = vsel %vm232_vm1, %v231_v39, %v226_v38 }
  0xd2   : > { %v240_v43 = vsel %vm239_vm2, %v238_v40, %v233_v42 }
  0xd3   : > { %v247_v44 = vsel %vm246_vm3, %v245_v41, %v240_v43 }
  0xd4   : > { %565 = vmatmul.mubr.msk.f32.vlgmr.msra.gmra.mrb[0].mxu0 %vm248_vm4, %v247_v44 }
 0x1a7   : > { %v317_v46 = vpop.f32.mrb[0].mxu0 }
 0x1a8   : > { %v321_v47 = vmax.f32 %v317_v46, 0.0  ;;  %v566_v48 = vpop.f32.mrb[1].mxu0 }
 0x1aa   : > { %570 = vmatmul.mubr.msk.f32.vlgmr.msra.gmra.mrb[0].mxu1 %vm323_vm6, %v321_v47 }
 0x27d   : > { %v397_v49 = vpop.f32.mrb[0].mxu1 }
 0x27e   : > { %v541_v50 = vmul.f32 -1.442695, %v397_v49  ;;  %v571_v51 = vpop.f32.mrb[1].mxu1 }
 0x280   : > { %631 = vpow2.f32 %v541_v50 }
 0x28a   : > { %v632_v52 = vpop.eup %631 }
 0x28b   : > { %v404_v53 = vadd.f32 1.0, %v632_v52 }
 0x28d   : > { %633 = vrcp.f32 %v404_v53 }
 0x297   : > { %v634_v55 = vpop.eup %633 }
 0x298   : > { %v410_v56 = vrot.slane %v634_v55, %v409_v54 }
 0x29a   : > { %416 = vbcast.lane.b32.xlu1 %v410_v56, 264  ;;  %412 = vbcast.lane.b32.xlu0 %v410_v56, 256 }
 0x29e   : > { %420 = vbcast.lane.b32.xlu1 %v410_v56, 272 }
 0x2a2   : > { %424 = vbcast.lane.b32.xlu1 %v410_v56, 280 }
 0x30c   : > { %v417_v57 = vpop.permute.xlu1 %416  ;;  %v413_v58 = vpop.permute.xlu0 %412 }
 0x30d   : > { %v428_v59 = vmul.f32 %v417_v57, %v885_v5  ;;  %v429_v60 = vmul.f32 %v417_v57, %v887_v6  ;;  %v426_v61 = vmul.f32 %v413_v58, %v875_v0  ;;  %v427_v62 = vmul.f32 %v413_v58, %v877_v1 }
 0x30f   : > { %436 = vst [vmem:[%s188_s27 + $0x10] sm:$0xff] %v428_v59  ;;  %437 = vst [vmem:[%s188_s27 + $0x18] sm:$0xff] %v429_v60 }
 0x310   : > { %434 = vst [vmem:[%s188_s27] sm:$0xff] %v426_v61  ;;  %435 = vst [vmem:[%s188_s27 + $0x8] sm:$0xff] %v427_v62  ;;  %v421_v63 = vpop.permute.xlu1 %420 }
 0x311   : > { %v430_v3 = vmul.f32 %v421_v63, %v879_v2  ;;  %v431_v5 = vmul.f32 %v421_v63, %v883_v4 }
 0x313   : > { %438 = vst [vmem:[%s188_s27 + $0x20] sm:$0xff] %v430_v3  ;;  %439 = vst [vmem:[%s188_s27 + $0x28] sm:$0xff] %v431_v5 }
 0x314   : > { %v425_v0 = vpop.permute.xlu1 %424 }
 0x315   : > { %v432_v1 = vmul.f32 %v425_v0, %v891_v8  ;;  %v433_v2 = vmul.f32 %v425_v0, %v893_v9 }
 0x317   : > { %440 = vst [vmem:[%s188_s27 + $0x30] sm:$0xff] %v432_v1  ;;  %441 = vst [vmem:[%s188_s27 + $0x38] sm:$0xff] %v433_v2 }
 0x318   : > { %678 = shalt.err (!%p675_p1)
}
 0x319   : > { %s679_s7 = scalar_lea.hbm %s928_s10, 1024  ;;  %s683_s19 = scalar_lea.hbm %s976_s3, 4096 }
 0x31a   : > { %p680_p3 = scmp.ne.s32.totalorder %s928_s10, %s679_s7  ;;  %p684_p0 = scmp.lt.u32.totalorder %s928_s10, %s976_s3 }
 0x31b   : > { %p685_p2 = scmp.lt.u32.totalorder %s683_s19, %s679_s7  ;;  %p687_p6 = scmp.lt.u32.totalorder %s679_s7, %s928_s10 }
 0x31c   : > { %p681_p4 = pnand %p680_p3, %p983_p10 }
 0x31d   : > { %p686_p7 = por %p685_p2, %p684_p0 }
 0x31e   : > { %p682_p5 = pneg %p681_p4 }
 0x31f   : > { %p688_p11 = por %p687_p6, %p686_p7 }
 0x321   : > { %p689_p12 = pnand %p688_p11, %p682_p5 }
 0x323   : > { %692 = shalt.err (!%p689_p12)
}
 0x324   : > { %s740_s26 = smov 256   ;;  %s741_s27 = smov 16  }
 0x325   : > { %580 = dma.vmem_to_hbm [thread:$0]  (%p983_p10), %s923_s28, 1024, %s928_s10, %s443_s16, %s740_s26, %s740_s26, %s741_s27  }
 0x326 PF: > { %p591_p8 = scmp.ge.s32.totalorder %s731_s15, 2  ;;  %s471_s29 = sand.u32 1, %s719_s12  }
 0x327   : > { %p984_p9 = scmp.ne.s32.totalorder %s981_s25, 0  ;;  %s472_s30 = scalar_lea.sflag [#allocation4], %s471_s29 }
 0x329   : > { %p587_p13 = pnand %p591_p8, %p984_p9 }
 0x32b   : > { %714 = dma.done.wait (!%p587_p13), %s472_s30, 1024  }
 0x32c   : > { %716 = vsyncadd (!%p587_p13), %s472_s30, 4294966272  ;;  %p16_p1 = scmp.ge.s32.totalorder %s787_s18, 6   ;;  %s985_s12 = smov %s723_s13 }
 0x32d   : > { %s986_s13 = smov %s727_s14  ;;  %s987_s14 = smov %s799_s21 }
 0x32e   : > { %s988_s15 = smov %s787_s18  ;;  %18 = sbr.rel (!%p16_p1) target bundleno = 5 (0x5), region = 77 }
 0x335   :  { %477 = vsyncpa [#allocation3], 1 }
 0x336   :  { %479 = vsyncpa [#allocation3 + $0x1], 1 }
 0x337   :  { %480 = vsyncpa [#allocation4], 1 }
 0x338   :  { %482 = vsyncpa [#allocation4 + $0x1], 1 }

</bundles_post_ra>
